<compile_context>
chip_gen: v7x
topology: tpu7x:2x2x1
jax: 0.10.0
libtpu: 0.0.40
codegen_flags: <defaults>
</compile_context>

<pallas_src>
import jax
import jax.numpy as jnp
from jax.experimental import pallas as pl
from jax.experimental.pallas import tpu as pltpu


_NEG_SLOPE = 0.01  # PyTorch F.leaky_relu default


def _mlp2_kernel(x_ref, w_ref, b_ref, o_ref):
    # x_ref: (TILE, K)      VMEM, K = pack * n_mlp   (packed input rows)
    # w_ref: (K, 2*pack)    VMEM, grouped block-diagonal weight (resident)
    # b_ref: (1, 2*pack)    VMEM, grouped bias row (resident)
    # o_ref: (TILE, 2*pack) VMEM, left half = p0, right half = p1
    z = jnp.dot(x_ref[...], w_ref[...], preferred_element_type=jnp.float32)
    z = z + b_ref[...]

    # leaky_relu (negative_slope = 0.01)
    z = jnp.where(z >= 0.0, z, _NEG_SLOPE * z)

    pack = z.shape[-1] // 2
    z0 = z[:, :pack]          # class-0 logits, lane-contiguous slab
    z1 = z[:, pack:]          # class-1 logits, lane-contiguous slab

    # Exact 2-way softmax via the (numerically stable) sigmoid identity:
    #   p0 = exp(z0)/(exp(z0)+exp(z1)) = 1/(1+exp(z1-z0)),  p1 = 1 - p0
    d = z0 - z1
    e = jnp.exp(-jnp.abs(d))          # in (0, 1] -> never overflows
    inv = 1.0 / (1.0 + e)             # exact divide (no approx reciprocal)
    p0 = jnp.where(d >= 0.0, inv, e * inv)

    o_ref[...] = jnp.concatenate([p0, 1.0 - p0], axis=-1)


def _round_up(a, m):
    return ((a + m - 1) // m) * m


def mlp_2_forward(x, w, b, *, tile_rows_max=4096):
    """x: (B, n_mlp) f32, w: (n_mlp, 2) f32, b: (2,) f32 -> (B, 2) f32."""
    B, n_mlp = x.shape

    # --- lane packing: `pack` logical rows per 128-lane packed row. ---
    if n_mlp <= 128 and 128 % n_mlp == 0:
        pack = 128 // n_mlp
    else:
        pack = 1
    while pack > 1 and B % pack != 0:   # keep the x reshape free (no padding)
        pack //= 2

    Bp = B // pack
    K = pack * n_mlp
    C = 2 * pack

    x_p = x.reshape(Bp, K)              # contiguous -> free reshape

    # Grouped block-diagonal weight: column k (< pack) holds the class-0
    # weights of packed sub-row k; column pack+k holds its class-1 weights.
    eye = jnp.eye(pack, dtype=w.dtype)
    w0 = jnp.einsum("pq,i->piq", eye, w[:, 0])      # (pack, n_mlp, pack)
    w1 = jnp.einsum("pq,i->piq", eye, w[:, 1])
    w_g = jnp.concatenate([w0, w1], axis=-1).reshape(K, C)
    b_g = jnp.repeat(b, pack).reshape(1, C)         # [b0]*pack + [b1]*pack

    # --- batch tiling over packed rows. ---
    if Bp <= tile_rows_max:
        if Bp >= 16:
            # keep >= 2 grid steps so both v7x TensorCores get work
            tile = min(tile_rows_max, _round_up(pl.cdiv(Bp, 2), 8))
        else:
            tile = Bp
    else:
        tile = tile_rows_max
    grid = (pl.cdiv(Bp, tile),)

    cost = pl.CostEstimate(
        flops=2 * Bp * K * C,            # block-diagonal matmul as executed
        transcendentals=B,               # one exp per logical row
        bytes_accessed=4 * (B * n_mlp + K * C + C + B * 2),
    )

    out_p = pl.pallas_call(
        _mlp2_kernel,
        out_shape=jax.ShapeDtypeStruct((Bp, C), jnp.float32),
        grid_spec=pltpu.PrefetchScalarGridSpec(
            num_scalar_prefetch=0,
            grid=grid,
            in_specs=[
                # x: tiled along batch -> double-buffered, lane-dense DMA.
                pl.BlockSpec((tile, K), lambda i: (i, 0)),
                # grouped weight + bias: resident across the whole grid.
                pl.BlockSpec((K, C), lambda i: (0, 0)),
                pl.BlockSpec((1, C), lambda i: (0, 0)),
            ],
            out_specs=pl.BlockSpec((tile, C), lambda i: (i, 0)),
        ),
        compiler_params=pltpu.CompilerParams(
            dimension_semantics=("parallel",),
            vmem_limit_bytes=32 * 1024 * 1024,
        ),
        cost_estimate=cost,
    )(x_p, w_g, b_g)

    # Un-group: (Bp, [p0 x pack | p1 x pack]) -> (B, 2). Identity when pack==1.
    return out_p.reshape(Bp, 2, pack).transpose(0, 2, 1).reshape(B, 2)


def _reference(x, w, b):
    z = x @ w + b[None, :]
    z = jnp.where(z >= 0.0, z, _NEG_SLOPE * z)
    return jax.nn.softmax(z, axis=1)


if __name__ == "__main__":
    key = jax.random.PRNGKey(0)
    kx, kw, kb, kx2, kx3, kw3, kb3 = jax.random.split(key, 7)

    n_mlp = 32   # hidden / input feature dim of the Linear

    # torch.nn.Linear-style U(-1/sqrt(fan_in), +1/sqrt(fan_in)) init.
    bound = 1.0 / (n_mlp ** 0.5)
    w = jax.random.uniform(kw, (n_mlp, 2), jnp.float32, minval=-bound, maxval=bound)
    b = jax.random.uniform(kb, (2,), jnp.float32, minval=-bound, maxval=bound)

    # --- Test 1: tiny batch (pack=4 path, single grid step). ---
    B = 8
    x = jax.random.normal(kx, (B, n_mlp), jnp.float32)
    out = jax.block_until_ready(mlp_2_forward(x, w, b))
    ref = _reference(x, w, b)
    assert out.shape == (B, 2)
    assert jnp.allclose(out, ref, atol=1e-4, rtol=1e-4), "mismatch vs reference (B=8)"

    # --- Test 2: larger batch, >=2 grid steps with a masked partial tile. ---
    B2 = 1000
    x2 = jax.random.normal(kx2, (B2, n_mlp), jnp.float32)
    out2 = jax.block_until_ready(mlp_2_forward(x2, w, b))
    ref2 = _reference(x2, w, b)
    assert out2.shape == (B2, 2)
    assert jnp.allclose(out2, ref2, atol=1e-4, rtol=1e-4), "mismatch vs reference (B=1000)"

    # --- Test 3: n_mlp that does not divide 128 -> pack=1 fallback path. ---
    n3 = 48
    bound3 = 1.0 / (n3 ** 0.5)
    w3 = jax.random.uniform(kw3, (n3, 2), jnp.float32, minval=-bound3, maxval=bound3)
    b3 = jax.random.uniform(kb3, (2,), jnp.float32, minval=-bound3, maxval=bound3)
    x3 = jax.random.normal(kx3, (24, n3), jnp.float32)
    out3 = jax.block_until_ready(mlp_2_forward(x3, w3, b3))
    ref3 = _reference(x3, w3, b3)
    assert out3.shape == (24, 2)
    assert jnp.allclose(out3, ref3, atol=1e-4, rtol=1e-4), "mismatch vs reference (pack=1)"

    print("KERNEL_OK")
</pallas_src>

<mosaic_0001>
module attributes {stable_mosaic.version = 11 : i64} {
  func.func @_mlp2_kernel(%arg0: i32, %arg1: memref<2x128xf32, #tpu.memory_space<vmem>>, %arg2: memref<128x8xf32, #tpu.memory_space<vmem>>, %arg3: memref<1x8xf32, #tpu.memory_space<vmem>>, %arg4: memref<2x8xf32, #tpu.memory_space<vmem>>) attributes {dimension_semantics = [#tpu.dimension_semantics<parallel>], iteration_bounds = array<i64: 1>, scalar_prefetch = 0 : i64, scratch_operands = 0 : i64, tpu.core_type = #tpu.core_type<tc>, window_params = [{transform_indices = @transform_0, window_bounds = array<i64: 2, 128>}, {pipeline_mode = #tpu.pipeline_mode<synchronous>, transform_indices = @transform_1, window_bounds = array<i64: 128, 8>}, {pipeline_mode = #tpu.pipeline_mode<synchronous>, transform_indices = @transform_2, window_bounds = array<i64: 1, 8>}, {transform_indices = @transform_3, window_bounds = array<i64: 2, 8>}]} {
    %c0 = arith.constant 0 : index
    %c0_0 = arith.constant 0 : index
    %0 = vector.load %arg1[%c0, %c0_0] : memref<2x128xf32, #tpu.memory_space<vmem>>, vector<2x128xf32>
    %c0_1 = arith.constant 0 : index
    %c0_2 = arith.constant 0 : index
    %1 = vector.load %arg2[%c0_1, %c0_2] : memref<128x8xf32, #tpu.memory_space<vmem>>, vector<128x8xf32>
    %cst = arith.constant dense<0.000000e+00> : vector<2x8xf32>
    %2 = tpu.matmul %0, %1, %cst {dimension_numbers = #tpu.dot_dimension_numbers<[1], [0], [0], [1], [0, 0, 1, 1], [], []>} : vector<2x128xf32>, vector<128x8xf32>, vector<2x8xf32> -> vector<2x8xf32>
    %c0_3 = arith.constant 0 : index
    %c0_4 = arith.constant 0 : index
    %3 = vector.load %arg3[%c0_3, %c0_4] : memref<1x8xf32, #tpu.memory_space<vmem>>, vector<1x8xf32>
    %4 = vector.broadcast %3 : vector<1x8xf32> to vector<2x8xf32>
    %5 = arith.addf %2, %4 : vector<2x8xf32>
    %cst_5 = arith.constant 0.000000e+00 : f32
    %6 = vector.broadcast %cst_5 : f32 to vector<2x8xf32>
    %7 = arith.cmpf oge, %5, %6 : vector<2x8xf32>
    %cst_6 = arith.constant 0.00999999977 : f32
    %8 = vector.broadcast %cst_6 : f32 to vector<2x8xf32>
    %9 = arith.mulf %8, %5 : vector<2x8xf32>
    %10 = arith.select %7, %5, %9 : vector<2x8xi1>, vector<2x8xf32>
    %11 = vector.extract_strided_slice %10 {offsets = [0, 0], sizes = [2, 4], strides = [1, 1]} : vector<2x8xf32> to vector<2x4xf32>
    %12 = vector.extract_strided_slice %10 {offsets = [0, 4], sizes = [2, 4], strides = [1, 1]} : vector<2x8xf32> to vector<2x4xf32>
    %13 = arith.subf %11, %12 : vector<2x4xf32>
    %14 = math.absf %13 : vector<2x4xf32>
    %cst_7 = arith.constant 0.000000e+00 : f32
    %15 = vector.broadcast %cst_7 : f32 to vector<2x4xf32>
    %16 = arith.subf %15, %14 : vector<2x4xf32>
    %17 = math.exp %16 : vector<2x4xf32>
    %cst_8 = arith.constant 1.000000e+00 : f32
    %18 = vector.broadcast %cst_8 : f32 to vector<2x4xf32>
    %19 = arith.addf %18, %17 : vector<2x4xf32>
    %cst_9 = arith.constant 1.000000e+00 : f32
    %20 = vector.broadcast %cst_9 : f32 to vector<2x4xf32>
    %21 = arith.divf %20, %19 : vector<2x4xf32>
    %cst_10 = arith.constant 0.000000e+00 : f32
    %22 = vector.broadcast %cst_10 : f32 to vector<2x4xf32>
    %23 = arith.cmpf oge, %13, %22 : vector<2x4xf32>
    %24 = arith.mulf %17, %21 : vector<2x4xf32>
    %25 = arith.select %23, %21, %24 : vector<2x4xi1>, vector<2x4xf32>
    %cst_11 = arith.constant 1.000000e+00 : f32
    %26 = vector.broadcast %cst_11 : f32 to vector<2x4xf32>
    %27 = arith.subf %26, %25 : vector<2x4xf32>
    %28 = tpu.concatenate %25, %27 in 1 : vector<2x4xf32>, vector<2x4xf32> -> vector<2x8xf32>
    %c0_12 = arith.constant 0 : index
    %c0_13 = arith.constant 0 : index
    %29 = vector.load %arg4[%c0_12, %c0_13] : memref<2x8xf32, #tpu.memory_space<vmem>>, vector<2x8xf32>
    tpu.vector_store %arg4[%c0_12, %c0_13], %28 {strides = array<i32>} : memref<2x8xf32, #tpu.memory_space<vmem>>, vector<2x8xf32>,
    return
  }
  func.func @transform_0(%arg0: i32) -> (i32, i32) {
    %c0_i32 = arith.constant 0 : i32
    %c0_i32_0 = arith.constant 0 : i32
    return %arg0, %c0_i32 : i32, i32
  }
  func.func @transform_1(%arg0: i32) -> (i32, i32) {
    %c0_i32 = arith.constant 0 : i32
    %c0_i32_0 = arith.constant 0 : i32
    %c0_i32_1 = arith.constant 0 : i32
    return %c0_i32, %c0_i32_0 : i32, i32
  }
  func.func @transform_2(%arg0: i32) -> (i32, i32) {
    %c0_i32 = arith.constant 0 : i32
    %c0_i32_0 = arith.constant 0 : i32
    %c0_i32_1 = arith.constant 0 : i32
    return %c0_i32, %c0_i32_0 : i32, i32
  }
  func.func @transform_3(%arg0: i32) -> (i32, i32) {
    %c0_i32 = arith.constant 0 : i32
    %c0_i32_0 = arith.constant 0 : i32
    return %arg0, %c0_i32 : i32, i32
  }
}

</mosaic_0001>

<bundles_post_ra>
// kernel: tpu_custom_call.1
= control target key start
LH: loop header
LB: loop body
LE: loop exit
PB: predicated region body
PF: predicated region fallthrough
CT: control target
= control target key end

     0   :  { %v261_v3 = vmov 0.0|0.0   ;;  %vm262_vm0 = vmmov 0   ;;  %v263_v6 = vmov 0.0   ;;  %s353_s0 = inlined_call_operand.vmem [shape: f32[2,128], index: 0, kind: input, shape index: {}]   ;;  %s354_s1 = inlined_call_operand.vmem [shape: f32[128,8], index: 1, kind: input, shape index: {}]   ;;  %s355_s2 = inlined_call_operand.vmem [shape: f32[1,8], index: 2, kind: input, shape index: {}]   ;;  %s356_s3 = inlined_call_operand.hbm [shape: f32[2,8], index: 3, kind: output, shape index: {}]  }
   0x1   :  { %v16_v0 = vld [vmem:[%s354_s1] sm:$0xff]  ;;  %v17_v1 = vld [vmem:[%s354_s1 + $0x8] sm:$0xff]  ;;  %v18_v2 = vld [vmem:[%s354_s1 + $0x10] sm:$0xff]  ;;  %203 = vmatprep.subr.bf16.mxu0 %v261_v3  ;;  %200 = vmatprep.mubr.msk.f32.mxu0 %vm262_vm0, %v263_v6 }
   0x2   :  { %v204_v4 = vpack.c.bf16 %v17_v1, %v16_v0  ;;  %v19_v5 = vld [vmem:[%s354_s1 + $0x18] sm:$0xff]  ;;  %v20_v8 = vld [vmem:[%s354_s1 + $0x20] sm:$0xff]  ;;  %v21_v9 = vld [vmem:[%s354_s1 + $0x28] sm:$0xff] }
   0x3   :  { %v207_v7 = vpack.c.bf16 %v19_v5, %v18_v2 }
   0x4   :  { %205 = vmatpush3.bf16.msra.mxu0 %v204_v4 }
   0x5   :  { %206 = vmatprep.subr.bf16.mxu0 %v261_v3 }
   0x6   :  { %8 = vsyncpa [#allocation3], 0  ;;  %v210_v10 = vpack.c.bf16 %v21_v9, %v20_v8  ;;  %v22_v11 = vld [vmem:[%s354_s1 + $0x30] sm:$0xff]  ;;  %v23_v12 = vld [vmem:[%s354_s1 + $0x38] sm:$0xff]  ;;  %vm132_vm3 = vcmask 31744   ;;  %vm134_vm4 = vcmask 58368  }
   0x7   :  { %v213_v13 = vpack.c.bf16 %v23_v12, %v22_v11  ;;  %v24_v14 = vld [vmem:[%s354_s1 + $0x40] sm:$0xff]  ;;  %v25_v15 = vld [vmem:[%s354_s1 + $0x48] sm:$0xff]  ;;  %v26_v17 = vld [vmem:[%s354_s1 + $0x50] sm:$0xff] }
   0x8   :  { %208 = vmatpush3.bf16.msra.mxu0 %v207_v7  ;;  %v216_v16 = vpack.c.bf16 %v25_v15, %v24_v14  ;;  %v27_v18 = vld [vmem:[%s354_s1 + $0x58] sm:$0xff]  ;;  %v28_v20 = vld [vmem:[%s354_s1 + $0x60] sm:$0xff]  ;;  %v29_v21 = vld [vmem:[%s354_s1 + $0x68] sm:$0xff] }
   0x9   :  { %209 = vmatprep.subr.bf16.mxu0 %v261_v3  ;;  %v219_v19 = vpack.c.bf16 %v27_v18, %v26_v17  ;;  %v222_v22 = vpack.c.bf16 %v29_v21, %v28_v20  ;;  %v30_v23 = vld [vmem:[%s354_s1 + $0x70] sm:$0xff]  ;;  %v31_v24 = vld [vmem:[%s354_s1 + $0x78] sm:$0xff]  ;;  %v15_v26 = vld [vmem:[%s353_s0] sm:$0x3]  ;;  %s264_s1 = smov 124   ;;  %s265_s0 = smov 4  }
   0xa   :  { %v225_v25 = vpack.c.bf16 %v31_v24, %v30_v23  ;;  %v150_v27 = vld [vmem:[%s355_s2] ss:$0 sm:$0xff]  ;;  %s266_s2 = smov [#allocation2]  }
   0xb   :  { %s142_s21 = sshll.u32 %s266_s2, 4  ;;  %s143_s21 = int_to_ptr.vmem [resolvable:$true] %s142_s21 }
   0xc   :  { %211 = vmatpush3.bf16.msra.mxu0 %v210_v10  ;;  %s237_s22 = scalar_lea.vmem %s143_s21, 32  ;;  %p242_p1 = scmp.lt.s32.totalorder %s143_s21, %s143_s21 }
   0xd   :  { %212 = vmatprep.subr.bf16.mxu0 %v261_v3  ;;  %p238_p0 = scmp.ne.s32.totalorder %s143_s21, %s237_s22  ;;  %p243_p2 = scmp.lt.s32.totalorder %s237_s22, %s237_s22 }
   0xf   :  { %p244_p3 = por %p243_p2, %p242_p1 }
  0x10   :  { %214 = vmatpush3.bf16.msra.mxu0 %v213_v13 }
  0x11   :  { %215 = vmatprep.subr.bf16.mxu0 %v261_v3  ;;  %p245_p4 = pnand %p244_p3, %p238_p0 }
  0x14   :  { %217 = vmatpush3.bf16.msra.mxu0 %v216_v16 }
  0x15   :  { %218 = vmatprep.subr.bf16.mxu0 %v261_v3 }
  0x18   :  { %220 = vmatpush3.bf16.msra.mxu0 %v219_v19 }
  0x19   :  { %221 = vmatprep.subr.bf16.mxu0 %v261_v3 }
  0x1c   :  { %223 = vmatpush3.bf16.msra.mxu0 %v222_v22 }
  0x1d   :  { %224 = vmatprep.subr.bf16.mxu0 %v261_v3 }
  0x20   :  { %226 = vmatpush3.bf16.msra.mxu0 %v225_v25 }
  0x23   :  { %201 = vmatmul.mubr.f32.vlgmr.msra.gmra.mrb[0].mxu0 %v15_v26 }
  0xf6   :  { %v105_v28 = vpop.f32.mrb[0].mxu0 }
  0xf7   :  { %v106_v29 = vadd.f32 %v150_v27, %v105_v28  ;;  %v202_v30 = vpop.f32.mrb[1].mxu0 }
  0xf9   :  { %vm109_vm1 = vcmp.ge.f32.partialorder %v106_v29, 0.0  ;;  %v110_v31 = vmul.f32 0.01, %v106_v29 }
  0xfb   :  { %v111_v32 = vsel %vm109_vm1, %v106_v29, %v110_v31 }
  0xfc   :  { %113 = vrot.lane.b32.xlu0 %v111_v32, %s264_s1 }
 0x16e   :  { %v114_v33 = vpop.permute.xlu0 %113 }
 0x16f   :  { %v116_v34 = vsub.f32 %v111_v32, %v114_v33 }
 0x171   :  { %v117_v35 = vand.u32 2147483647, %v116_v34  ;;  %vm124_vm2 = vcmp.ge.f32.partialorder %v116_v34, 0.0 }
 0x173   :  { %v118_v36 = vsub.f32 0.0, %v117_v35 }
 0x175   :  { %v119_v37 = vmul.f32 1.442695, %v118_v36 }
 0x177   :  { %233 = vpow2.f32 %v119_v37 }
 0x181   :  { %v234_v38 = vpop.eup %233 }
 0x182   :  { %v121_v39 = vadd.f32 1.0, %v234_v38 }
 0x184   :  { %235 = vrcp.f32 %v121_v39 }
 0x18e   :  { %v236_v40 = vpop.eup %235 }
 0x18f   :  { %v125_v41 = vmul.f32 %v236_v40, %v234_v38 }
 0x191   :  { %v126_v42 = vsel %vm124_vm2, %v236_v40, %v125_v41 }
 0x192   :  { %v127_v43 = vsub.f32 1.0, %v126_v42 }
 0x194   :  { %129 = vrot.lane.b32.xlu0 %v127_v43, %s265_s0 }
 0x206   :  { %v130_v44 = vpop.permute.xlu0 %129 }
 0x207   :  { %v133_v45 = vsel %vm132_vm3, %v126_v42, %v130_v44 }
 0x208   :  { %135 = vst.msk [vmem:[#allocation2] sm:$0x3] %vm134_vm4, %v133_v45 }
 0x209   :  { %248 = shalt.err (!%p245_p4)
}
 0x20a   :  { %s249_s25 = scalar_lea.hbm %s356_s3, 32 }
 0x20b   :  { %p250_p5 = scmp.ne.s32.totalorder %s356_s3, %s249_s25  ;;  %p253_p6 = scmp.lt.u32.totalorder %s249_s25, %s356_s3 }
 0x20d   :  { %p255_p7 = pnand %p253_p6, %p250_p5 }
 0x20f   :  { %258 = shalt.err (!%p255_p7)
}
 0x210   :  { %145 = dma.vmem_to_hbm [thread:$0]  %s143_s21, 32, %s356_s3, [#allocation3]  }
 0x211   :  { %259 = dma.done.wait [#allocation3], 32  }
 0x212   :  { %260 = vsyncadd [#allocation3], 4294967264 }
 0x213   :  { %149 = vsyncpa [#allocation3], 1 }

</bundles_post_ra>
